<compile_context>
chip_gen: v6e
topology: v6e:2x2x1
jax: 0.10.0
libtpu: 0.0.40
codegen_flags: <defaults>
</compile_context>

<pallas_src>
import jax
import jax.numpy as jnp
from jax.experimental import pallas as pl
from jax.experimental.pallas import tpu as pltpu


def _vwap_mlp_kernel(x_ref, w1_ref, b1_ref, w2_ref, b2_ref, w3_ref, b3_ref, o_ref):
    x = x_ref[...]                                    # (tm, D) f32, batch on sublanes

    # Layer 1: h1^T = relu(W1 @ x^T + b1).  The x transpose is folded into the
    # MXU op via NT dimension numbers (contract last dim of both operands).
    h1 = jax.lax.dot_general(
        w1_ref[...], x, (((1,), (1,)), ((), ())),
        preferred_element_type=jnp.float32)           # (32, tm)
    h1 = jnp.maximum(h1 + b1_ref[...], 0.0)

    # Layer 2: h2^T = relu(W2 @ h1^T + b2).
    h2 = jnp.dot(w2_ref[...], h1, preferred_element_type=jnp.float32)  # (16, tm)
    h2 = jnp.maximum(h2 + b2_ref[...], 0.0)

    # Layer 3 (16 -> 1): broadcast-multiply + sublane reduction on the VPU/XLU
    # instead of an N=1 MXU matmul; result stays lane-dense.
    z = jnp.sum(h2 * w3_ref[...], axis=0, keepdims=True) + b3_ref[...]  # (1, tm)

    o_ref[0] = jax.nn.sigmoid(z).astype(o_ref.dtype)  # lane-dense (1, tm) store


def _round_up(n, m):
    return ((n + m - 1) // m) * m


def vwap_forward(x, params, *, tm=2048):
    """x: (B, input_dim) float32.  Returns (B, 1) float32.

    params = (W1 (32,D), b1 (32,1), W2 (16,32), b2 (16,1), W3 (16,1), b3 (1,1));
    layer-1/2 weights are in PyTorch (out, in) layout, layer-3 weight is a column.
    """
    w1, b1, w2, b2, w3, b3 = params
    B, D = x.shape
    H1, H2 = w1.shape[0], w2.shape[0]

    # Row tile: multiple of 128 (lane-dense output), clamped for small batches.
    tm = max(128, min(_round_up(tm, 128), _round_up(B, 128)))
    B_pad = _round_up(B, tm)
    if B_pad != B:
        x = jnp.pad(x, ((0, B_pad - B), (0, 0)))
    grid = (B_pad // tm,)

    rep2 = lambda shape: pl.BlockSpec(shape, lambda i: (0, 0))  # replicated params

    cost = pl.CostEstimate(
        flops=2 * B_pad * (D * H1 + H1 * H2 + H2),
        transcendentals=B_pad,                         # sigmoid
        bytes_accessed=B_pad * D * 4 + B_pad * 4
        + 4 * sum(int(p.size) for p in params),
    )

    out3 = pl.pallas_call(
        _vwap_mlp_kernel,
        out_shape=jax.ShapeDtypeStruct((grid[0], 1, tm), jnp.float32),
        grid=grid,
        in_specs=[
            pl.BlockSpec((tm, D), lambda i: (i, 0)),   # x tile over batch rows
            rep2((H1, D)), rep2((H1, 1)),              # W1, b1
            rep2((H2, H1)), rep2((H2, 1)),             # W2, b2
            rep2((H2, 1)), rep2((1, 1)),               # W3 (column), b3
        ],
        out_specs=pl.BlockSpec((1, 1, tm), lambda i: (i, 0, 0)),  # lane-dense blocks
        compiler_params=pltpu.CompilerParams(
            dimension_semantics=("parallel",)),
        cost_estimate=cost,
    )(x, w1, b1, w2, b2, w3, b3)

    return out3.reshape(B_pad, 1)[:B]


def init_params(key, input_dim):
    """PyTorch nn.Linear-style init (U[-1/sqrt(fan_in), 1/sqrt(fan_in)])."""
    shapes = [((32, input_dim), (32, 1), input_dim),
              ((16, 32), (16, 1), 32),
              ((16, 1), (1, 1), 16)]
    params = []
    for (w_shape, b_shape, fan_in) in shapes:
        key, kw, kb = jax.random.split(key, 3)
        bound = float(fan_in) ** -0.5
        params.append(jax.random.uniform(kw, w_shape, jnp.float32, -bound, bound))
        params.append(jax.random.uniform(kb, b_shape, jnp.float32, -bound, bound))
    return tuple(params)


if __name__ == "__main__":
    key = jax.random.PRNGKey(0)
    key, kx = jax.random.split(key)

    B, INPUT_DIM = 8, 16
    x = jax.random.normal(kx, (B, INPUT_DIM), jnp.float32)
    params = init_params(key, INPUT_DIM)

    out = vwap_forward(x, params)
    out = jax.block_until_ready(out)

    # Reference in plain JAX (PyTorch semantics: y = x @ W^T + b).
    w1, b1, w2, b2, w3, b3 = params
    h1 = jnp.maximum(x @ w1.T + b1.T, 0.0)
    h2 = jnp.maximum(h1 @ w2.T + b2.T, 0.0)
    ref = jax.nn.sigmoid(h2 @ w3 + b3.T)
    assert out.shape == (B, 1)
    assert jnp.allclose(out, ref, atol=1e-5), "mismatch vs reference"

    print("KERNEL_OK")
</pallas_src>

<mosaic_0001>
module attributes {stable_mosaic.version = 11 : i64} {
  func.func @_vwap_mlp_kernel(%arg0: i32, %arg1: memref<128x16xf32, #tpu.memory_space<vmem>>, %arg2: memref<32x16xf32, #tpu.memory_space<vmem>>, %arg3: memref<32x1xf32, #tpu.memory_space<vmem>>, %arg4: memref<16x32xf32, #tpu.memory_space<vmem>>, %arg5: memref<16x1xf32, #tpu.memory_space<vmem>>, %arg6: memref<16x1xf32, #tpu.memory_space<vmem>>, %arg7: memref<1x1xf32, #tpu.memory_space<vmem>>, %arg8: memref<1x1x128xf32, #tpu.memory_space<vmem>>) attributes {dimension_semantics = [#tpu.dimension_semantics<parallel>], iteration_bounds = array<i64: 1>, scalar_prefetch = 0 : i64, scratch_operands = 0 : i64, tpu.core_type = #tpu.core_type<tc>, window_params = [{transform_indices = @transform_0, window_bounds = array<i64: 128, 16>}, {pipeline_mode = #tpu.pipeline_mode<synchronous>, transform_indices = @transform_1, window_bounds = array<i64: 32, 16>}, {pipeline_mode = #tpu.pipeline_mode<synchronous>, transform_indices = @transform_2, window_bounds = array<i64: 32, 1>}, {pipeline_mode = #tpu.pipeline_mode<synchronous>, transform_indices = @transform_3, window_bounds = array<i64: 16, 32>}, {pipeline_mode = #tpu.pipeline_mode<synchronous>, transform_indices = @transform_4, window_bounds = array<i64: 16, 1>}, {pipeline_mode = #tpu.pipeline_mode<synchronous>, transform_indices = @transform_5, window_bounds = array<i64: 16, 1>}, {pipeline_mode = #tpu.pipeline_mode<synchronous>, transform_indices = @transform_6, window_bounds = array<i64: 1, 1>}, {transform_indices = @transform_7, window_bounds = array<i64: 1, 1, 128>}]} {
    %c0 = arith.constant 0 : index
    %c0_0 = arith.constant 0 : index
    %0 = vector.load %arg1[%c0, %c0_0] : memref<128x16xf32, #tpu.memory_space<vmem>>, vector<128x16xf32>
    %c0_1 = arith.constant 0 : index
    %c0_2 = arith.constant 0 : index
    %1 = vector.load %arg2[%c0_1, %c0_2] : memref<32x16xf32, #tpu.memory_space<vmem>>, vector<32x16xf32>
    %cst = arith.constant dense<0.000000e+00> : vector<32x128xf32>
    %2 = tpu.matmul %1, %0, %cst {dimension_numbers = #tpu.dot_dimension_numbers<[1], [1], [0], [0], [0, 0, 1, 0], [], []>} : vector<32x16xf32>, vector<128x16xf32>, vector<32x128xf32> -> vector<32x128xf32>
    %c0_3 = arith.constant 0 : index
    %c0_4 = arith.constant 0 : index
    %3 = vector.load %arg3[%c0_3, %c0_4] : memref<32x1xf32, #tpu.memory_space<vmem>>, vector<32x1xf32>
    %4 = vector.broadcast %3 : vector<32x1xf32> to vector<32x128xf32>
    %5 = arith.addf %2, %4 : vector<32x128xf32>
    %cst_5 = arith.constant 0.000000e+00 : f32
    %6 = vector.broadcast %cst_5 : f32 to vector<32x128xf32>
    %7 = arith.maximumf %5, %6 : vector<32x128xf32>
    %c0_6 = arith.constant 0 : index
    %c0_7 = arith.constant 0 : index
    %8 = vector.load %arg4[%c0_6, %c0_7] : memref<16x32xf32, #tpu.memory_space<vmem>>, vector<16x32xf32>
    %cst_8 = arith.constant dense<0.000000e+00> : vector<16x128xf32>
    %9 = tpu.matmul %8, %7, %cst_8 {dimension_numbers = #tpu.dot_dimension_numbers<[1], [0], [0], [1], [0, 0, 1, 1], [], []>} : vector<16x32xf32>, vector<32x128xf32>, vector<16x128xf32> -> vector<16x128xf32>
    %c0_9 = arith.constant 0 : index
    %c0_10 = arith.constant 0 : index
    %10 = vector.load %arg5[%c0_9, %c0_10] : memref<16x1xf32, #tpu.memory_space<vmem>>, vector<16x1xf32>
    %11 = vector.broadcast %10 : vector<16x1xf32> to vector<16x128xf32>
    %12 = arith.addf %9, %11 : vector<16x128xf32>
    %cst_11 = arith.constant 0.000000e+00 : f32
    %13 = vector.broadcast %cst_11 : f32 to vector<16x128xf32>
    %14 = arith.maximumf %12, %13 : vector<16x128xf32>
    %c0_12 = arith.constant 0 : index
    %c0_13 = arith.constant 0 : index
    %15 = vector.load %arg6[%c0_12, %c0_13] : memref<16x1xf32, #tpu.memory_space<vmem>>, vector<16x1xf32>
    %16 = vector.broadcast %15 : vector<16x1xf32> to vector<16x128xf32>
    %17 = arith.mulf %14, %16 : vector<16x128xf32>
    %cst_14 = arith.constant dense<0.000000e+00> : vector<128xf32>
    %18 = vector.multi_reduction <add>, %17, %cst_14 [0] : vector<16x128xf32> to vector<128xf32>
    %19 = vector.shape_cast %18 : vector<128xf32> to vector<1x128xf32>
    %c0_15 = arith.constant 0 : index
    %c0_16 = arith.constant 0 : index
    %20 = vector.load %arg7[%c0_15, %c0_16] : memref<1x1xf32, #tpu.memory_space<vmem>>, vector<1x1xf32>
    %21 = vector.broadcast %20 : vector<1x1xf32> to vector<1x128xf32>
    %22 = arith.addf %19, %21 : vector<1x128xf32>
    %23 = arith.negf %22 : vector<1x128xf32>
    %24 = math.exp %23 : vector<1x128xf32>
    %cst_17 = arith.constant 1.000000e+00 : f32
    %25 = vector.broadcast %cst_17 : f32 to vector<1x128xf32>
    %26 = arith.addf %25, %24 : vector<1x128xf32>
    %27 = arith.divf %25, %26 : vector<1x128xf32>
    %c0_18 = arith.constant 0 : index
    %c0_19 = arith.constant 0 : index
    %c0_20 = arith.constant 0 : index
    %28 = vector.load %arg8[%c0_18, %c0_19, %c0_20] : memref<1x1x128xf32, #tpu.memory_space<vmem>>, vector<1x1x128xf32>
    %29 = vector.shape_cast %28 : vector<1x1x128xf32> to vector<1x128xf32>
    %30 = vector.shape_cast %27 : vector<1x128xf32> to vector<1x1x128xf32>
    tpu.vector_store %arg8[%c0_18, %c0_19, %c0_20], %30 {strides = array<i32>} : memref<1x1x128xf32, #tpu.memory_space<vmem>>, vector<1x1x128xf32>,
    return
  }
  func.func @transform_0(%arg0: i32) -> (i32, i32) {
    %c0_i32 = arith.constant 0 : i32
    %c0_i32_0 = arith.constant 0 : i32
    return %arg0, %c0_i32 : i32, i32
  }
  func.func @transform_1(%arg0: i32) -> (i32, i32) {
    %c0_i32 = arith.constant 0 : i32
    %c0_i32_0 = arith.constant 0 : i32
    %c0_i32_1 = arith.constant 0 : i32
    return %c0_i32, %c0_i32_0 : i32, i32
  }
  func.func @transform_2(%arg0: i32) -> (i32, i32) {
    %c0_i32 = arith.constant 0 : i32
    %c0_i32_0 = arith.constant 0 : i32
    %c0_i32_1 = arith.constant 0 : i32
    return %c0_i32, %c0_i32_0 : i32, i32
  }
  func.func @transform_3(%arg0: i32) -> (i32, i32) {
    %c0_i32 = arith.constant 0 : i32
    %c0_i32_0 = arith.constant 0 : i32
    %c0_i32_1 = arith.constant 0 : i32
    return %c0_i32, %c0_i32_0 : i32, i32
  }
  func.func @transform_4(%arg0: i32) -> (i32, i32) {
    %c0_i32 = arith.constant 0 : i32
    %c0_i32_0 = arith.constant 0 : i32
    %c0_i32_1 = arith.constant 0 : i32
    return %c0_i32, %c0_i32_0 : i32, i32
  }
  func.func @transform_5(%arg0: i32) -> (i32, i32) {
    %c0_i32 = arith.constant 0 : i32
    %c0_i32_0 = arith.constant 0 : i32
    %c0_i32_1 = arith.constant 0 : i32
    return %c0_i32, %c0_i32_0 : i32, i32
  }
  func.func @transform_6(%arg0: i32) -> (i32, i32) {
    %c0_i32 = arith.constant 0 : i32
    %c0_i32_0 = arith.constant 0 : i32
    %c0_i32_1 = arith.constant 0 : i32
    return %c0_i32, %c0_i32_0 : i32, i32
  }
  func.func @transform_7(%arg0: i32) -> (i32, i32, i32) {
    %c0_i32 = arith.constant 0 : i32
    %c0_i32_0 = arith.constant 0 : i32
    %c0_i32_1 = arith.constant 0 : i32
    return %arg0, %c0_i32, %c0_i32_0 : i32, i32, i32
  }
}

</mosaic_0001>

<bundles_post_ra>
// kernel: tpu_custom_call.1
= control target key start
LH: loop header
LB: loop body
LE: loop exit
PB: predicated region body
PF: predicated region fallthrough
CT: control target
= control target key end

     0   :  { %s678_s0 = inlined_call_operand.vmem [shape: f32[128,16], index: 0, kind: input, shape index: {}]   ;;  %s679_s1 = inlined_call_operand.vmem [shape: f32[32,16], index: 1, kind: input, shape index: {}]   ;;  %s680_s2 = inlined_call_operand.vmem [shape: f32[32,1], index: 2, kind: input, shape index: {}]   ;;  %s681_s3 = inlined_call_operand.vmem [shape: f32[16,32], index: 3, kind: input, shape index: {}]   ;;  %s682_s4 = inlined_call_operand.vmem [shape: f32[16,1], index: 4, kind: input, shape index: {}]   ;;  %s683_s5 = inlined_call_operand.vmem [shape: f32[16,1], index: 5, kind: input, shape index: {}]   ;;  %s684_s6 = inlined_call_operand.<no memory space> [shape: f32[1,1], index: 6, kind: input, shape index: {}]   ;;  %s685_s7 = inlined_call_operand.hbm [shape: f32[1,1,128], index: 7, kind: output, shape index: {}]  }
   0x1   :  { %v12_v0 = vstv %s684_s6 }
   0x2   :  { %13 = vst [vmem:[#allocation2] sm:$0x1] %v12_v0 }
   0x3   :  { %v44_v1 = vld [vmem:[%s678_s0 + $0x78] sm:$0xff]  ;;  %vm73_vm0 = vcmask 130048   ;;  %v43_v2 = vld [vmem:[%s678_s0 + $0x70] sm:$0xff]  ;;  %v502_v3 = vmov 0   ;;  %v42_v4 = vld [vmem:[%s678_s0 + $0x68] sm:$0xff] }
   0x4   :  { %423 = vmatprep.subr.msk.mxu0 %vm73_vm0, %v44_v1  ;;  %474 = vset.pattern.permute.xlu0 %v502_v3  ;;  %v45_v5 = vld [vmem:[%s679_s1] sm:$0xff]  ;;  %v52_v6 = vld [vmem:[%s680_s2 + $0x18] sm:$0xff]  ;;  %v50_v7 = vld [vmem:[%s680_s2 + $0x8] sm:$0xff] }
   0x5   :  { %424 = vmatpush3.xpose.msk.msra.mxu0 %vm73_vm0, %v44_v1  ;;  %475 = vset.pattern.permute.xlu1 %v502_v3  ;;  %v41_v8 = vld [vmem:[%s678_s0 + $0x60] sm:$0xff]  ;;  %v51_v9 = vld [vmem:[%s680_s2 + $0x10] sm:$0xff] }
   0x6   :  { %425 = vmatprep.subr.msk.mxu0 %vm73_vm0, %v43_v2  ;;  %455 = vmatprep.mubr.msk.f32.mxu0 %vm73_vm0, %v45_v5  ;;  %v49_v10 = vld [vmem:[%s680_s2] sm:$0xff] }
   0x7   :  { %70 = vperm.xlu0 %474, %v52_v6   ;;  %60 = vperm.xlu1 %475, %v50_v7  }
   0x9   :  { %426 = vmatpush3.xpose.msk.msra.mxu0 %vm73_vm0, %v43_v2 }
   0xa   :  { %427 = vmatprep.subr.msk.mxu0 %vm73_vm0, %v42_v4 }
   0xb   :  { %14 = vsyncpa [#allocation4], 0  ;;  %65 = vperm.xlu0 %474, %v51_v9   ;;  %v40_v11 = vld [vmem:[%s678_s0 + $0x58] sm:$0xff]  ;;  %v225_v12 = vld [vmem:[%s682_s4] sm:$0xff]  ;;  %55 = vperm.xlu1 %475, %v49_v10   ;;  %vm237_vm1 = vcmask 261120   ;;  %v348_v61 = vlaneseq }
   0xc   :  { %v226_v13 = vld [vmem:[%s682_s4 + $0x8] sm:$0xff]  ;;  %v39_v14 = vld [vmem:[%s678_s0 + $0x50] sm:$0xff]  ;;  %v321_v15 = vld [vmem:[%s683_s5] sm:$0xff] }
   0xd   :  { %428 = vmatpush3.xpose.msk.msra.mxu0 %vm73_vm0, %v42_v4  ;;  %v322_v16 = vld [vmem:[%s683_s5 + $0x8] sm:$0xff]  ;;  %v342_v18 = vld [vmem:[#allocation2] sm:$0x1]  ;;  %v36_v20 = vld [vmem:[%s678_s0 + $0x38] sm:$0xff]  ;;  %v349_v0 = vshrl.u32 %v348_v61, 7 }
   0xe   :  { %429 = vmatprep.subr.msk.mxu0 %vm73_vm0, %v41_v8  ;;  %v38_v17 = vld [vmem:[%s678_s0 + $0x48] sm:$0xff]  ;;  %v37_v19 = vld [vmem:[%s678_s0 + $0x40] sm:$0xff]  ;;  %v35_v21 = vld [vmem:[%s678_s0 + $0x30] sm:$0xff] }
   0xf   :  { %229 = vperm.xlu0 %474, %v225_v12   ;;  %234 = vperm.xlu1 %475, %v226_v13   ;;  %v34_v22 = vld [vmem:[%s678_s0 + $0x28] sm:$0xff]  ;;  %v33_v23 = vld [vmem:[%s678_s0 + $0x20] sm:$0xff]  ;;  %v32_v24 = vld [vmem:[%s678_s0 + $0x18] sm:$0xff]  ;;  %v350_v3 = vsub.s32 0, %v349_v0 }
  0x10   :  { %v31_v25 = vld [vmem:[%s678_s0 + $0x10] sm:$0xff]  ;;  %v30_v26 = vld [vmem:[%s678_s0 + $0x8] sm:$0xff]  ;;  %v29_v27 = vld [vmem:[%s678_s0] sm:$0xff] }
  0x11   :  { %430 = vmatpush3.xpose.msk.msra.mxu0 %vm73_vm0, %v41_v8  ;;  %v46_v28 = vld [vmem:[%s679_s1 + $0x8] sm:$0xff]  ;;  %v47_v29 = vld [vmem:[%s679_s1 + $0x10] sm:$0xff]  ;;  %v48_v30 = vld [vmem:[%s679_s1 + $0x18] sm:$0xff] }
  0x12   :  { %431 = vmatprep.subr.msk.mxu0 %vm73_vm0, %v40_v11  ;;  %v223_v31 = vld [vmem:[%s681_s3] sm:$0xff]  ;;  %v224_v48 = vld [vmem:[%s681_s3 + $0x8] sm:$0xff]  ;;  %s503_s3 = smov [#allocation3]  }
  0x13   :  { %325 = vperm.xlu0 %474, %v321_v15   ;;  %330 = vperm.xlu1 %475, %v322_v16   ;;  %s366_s30 = sshll.u32 %s503_s3, 4  ;;  %s367_s30 = int_to_ptr.vmem [resolvable:$true] %s366_s30 }
  0x14   :  { %469 = vmatprep.mubr.msk.f32.mxu1 %vm237_vm1, %v223_v31  ;;  %s480_s8 = scalar_lea.vmem %s367_s30, 16  ;;  %s484_s9 = scalar_lea.vmem %s367_s30, 32 }
  0x15   :  { %432 = vmatpush3.xpose.msk.msra.mxu0 %vm73_vm0, %v40_v11  ;;  %p481_p0 = scmp.ne.s32.totalorder %s367_s30, %s480_s8  ;;  %p485_p1 = scmp.lt.s32.totalorder %s367_s30, %s367_s30 }
  0x16   :  { %433 = vmatprep.subr.msk.mxu0 %vm73_vm0, %v39_v14  ;;  %p486_p2 = scmp.lt.s32.totalorder %s484_s9, %s480_s8 }
  0x17   :  { %345 = vperm.xlu0 %474, %v342_v18  }
  0x18   :  { %p487_p3 = por %p486_p2, %p485_p1 }
  0x19   :  { %434 = vmatpush3.xpose.msk.msra.mxu0 %vm73_vm0, %v39_v14 }
  0x1a   :  { %435 = vmatprep.subr.msk.mxu0 %vm73_vm0, %v38_v17  ;;  %p488_p4 = pnand %p487_p3, %p481_p0 }
  0x1d   :  { %436 = vmatpush3.xpose.msk.msra.mxu0 %vm73_vm0, %v38_v17 }
  0x1e   :  { %437 = vmatprep.subr.msk.mxu0 %vm73_vm0, %v37_v19 }
  0x21   :  { %438 = vmatpush3.xpose.msk.msra.mxu0 %vm73_vm0, %v37_v19 }
  0x22   :  { %439 = vmatprep.subr.msk.mxu0 %vm73_vm0, %v36_v20 }
  0x25   :  { %440 = vmatpush3.xpose.msk.msra.mxu0 %vm73_vm0, %v36_v20 }
  0x26   :  { %441 = vmatprep.subr.msk.mxu0 %vm73_vm0, %v35_v21 }
  0x29   :  { %442 = vmatpush3.xpose.msk.msra.mxu0 %vm73_vm0, %v35_v21 }
  0x2a   :  { %443 = vmatprep.subr.msk.mxu0 %vm73_vm0, %v34_v22 }
  0x2d   :  { %444 = vmatpush3.xpose.msk.msra.mxu0 %vm73_vm0, %v34_v22 }
  0x2e   :  { %445 = vmatprep.subr.msk.mxu0 %vm73_vm0, %v33_v23 }
  0x31   :  { %446 = vmatpush3.xpose.msk.msra.mxu0 %vm73_vm0, %v33_v23 }
  0x32   :  { %447 = vmatprep.subr.msk.mxu0 %vm73_vm0, %v32_v24 }
  0x35   :  { %448 = vmatpush3.xpose.msk.msra.mxu0 %vm73_vm0, %v32_v24 }
  0x36   :  { %449 = vmatprep.subr.msk.mxu0 %vm73_vm0, %v31_v25 }
  0x39   :  { %450 = vmatpush3.xpose.msk.msra.mxu0 %vm73_vm0, %v31_v25 }
  0x3a   :  { %451 = vmatprep.subr.msk.mxu0 %vm73_vm0, %v30_v26 }
  0x3d   :  { %452 = vmatpush3.xpose.msk.msra.mxu0 %vm73_vm0, %v30_v26 }
  0x3e   :  { %453 = vmatprep.subr.msk.mxu0 %vm73_vm0, %v29_v27 }
  0x41   :  { %454 = vmatpush3.xpose.msk.msra.mxu0 %vm73_vm0, %v29_v27 }
  0x44   :  { %456 = vmatmul.mubr.msk.f32.vlgmr.msra.gmra.mxu0 %vm73_vm0, %v46_v28 }
  0x45   :  { %458 = vmatprep.mubr.msk.f32.mxu0 %vm73_vm0, %v47_v29 }
  0x48   :  { %459 = vmatmul.mubr.msk.f32.gmra.mxu0 %vm73_vm0, %v48_v30 }
  0x82   :  { %v71_v32 = vpop.permute.xlu0 %70  ;;  %v61_v34 = vpop.permute.xlu1 %60 }
  0x86   :  { %v66_v38 = vpop.permute.xlu0 %65  ;;  %v56_v43 = vpop.permute.xlu1 %55 }
  0x8a   :  { %v230_v49 = vpop.permute.xlu0 %229  ;;  %v235_v50 = vpop.permute.xlu1 %234 }
  0x8e   :  { %v326_v57 = vpop.permute.xlu0 %325  ;;  %v331_v58 = vpop.permute.xlu1 %330 }
  0x92   :  { %v346_v5 = vpop.permute.xlu0 %345 }
  0x93   :  { %v351_v7 = vrot.slane %v346_v5, %v350_v3 }
 0x104   :  { %v457_v33 = vpop.f32.mrf.mxu0 }
 0x105   :  { %v206_v40 = vadd.f32 %v457_v33, %v61_v34 }
 0x106   :  { %v200_v35 = vpop.f32.mrf.mxu0 }
 0x107   :  { %v201_v44 = vadd.f32 %v200_v35, %v56_v43  ;;  %v220_v46 = vmax.f32 %v206_v40, 0.0 }
 0x108   :  { %v460_v36 = vpop.f32.mrf.mxu0 }
 0x109   :  { %v216_v37 = vadd.f32 %v460_v36, %v71_v32  ;;  %v219_v47 = vmax.f32 %v201_v44, 0.0 }
 0x10a   :  { %v210_v39 = vpop.f32.mrf.mxu0 }
 0x10b   :  { %v222_v41 = vmax.f32 %v216_v37, 0.0  ;;  %v211_v42 = vadd.f32 %v210_v39, %v66_v38 }
 0x10d   :  { %v221_v45 = vmax.f32 %v211_v42, 0.0  ;;  %461 = vmatprep.subr.mxu1 %v222_v41 }
 0x10e   :  { %462 = vmatpush3.msra.mxu1 %v222_v41 }
 0x10f   :  { %463 = vmatprep.subr.mxu1 %v221_v45 }
 0x110   :  { %464 = vmatpush3.msra.mxu1 %v221_v45 }
 0x111   :  { %465 = vmatprep.subr.mxu1 %v220_v46 }
 0x112   :  { %466 = vmatpush3.msra.mxu1 %v220_v46 }
 0x113   :  { %467 = vmatprep.subr.mxu1 %v219_v47 }
 0x114   :  { %468 = vmatpush3.msra.mxu1 %v219_v47 }
 0x115   :  { %470 = vmatmul.mubr.msk.f32.vlgmr.msra.gmra.mxu1 %vm237_vm1, %v224_v48 }
 0x1d5   :  { %v471_v51 = vpop.f32.mrf.mxu1 }
 0x1d6   :  { %v316_v52 = vadd.f32 %v471_v51, %v235_v50 }
 0x1d7   :  { %v310_v53 = vpop.f32.mrf.mxu1 }
 0x1d8   :  { %v320_v54 = vmax.f32 %v316_v52, 0.0  ;;  %v311_v55 = vadd.f32 %v310_v53, %v230_v49 }
 0x1da   :  { %v319_v56 = vmax.f32 %v311_v55, 0.0  ;;  %v334_v59 = vmul.f32 %v331_v58, %v320_v54 }
 0x1dc   :  { %v333_v60 = vmul.f32 %v326_v57, %v319_v56 }
 0x1de   :  { %v335_v62 = vadd.f32 %v334_v59, %v333_v60 }
 0x1e0   :  { %v336_v63 = vrot.slane %v335_v62, 4 }
 0x1e2   :  { %v337_v1 = vadd.f32 %v336_v63, %v335_v62 }
 0x1e4   :  { %v338_v2 = vrot.slane %v337_v1, 2 }
 0x1e6   :  { %v339_v4 = vadd.f32 %v338_v2, %v337_v1 }
 0x1e8   :  { %v340_v6 = vrot.slane %v339_v4, 1 }
 0x1ea   :  { %v341_v8 = vadd.f32 %v340_v6, %v339_v4 }
 0x1ec   :  { %v352_v9 = vadd.f32 %v351_v7, %v341_v8 }
 0x1ee   :  { %v396_v10 = vmul.f32 -1.442695, %v352_v9 }
 0x1f0   :  { %476 = vpow2.f32 %v396_v10 }
 0x1fd   :  { %v477_v11 = vpop.eup %476 }
 0x1fe   :  { %v356_v12 = vadd.f32 1.0, %v477_v11 }
 0x200   :  { %478 = vrcp.f32 %v356_v12 }
 0x20d   :  { %v479_v13 = vpop.eup %478 }
 0x20e   :  { %359 = vst [vmem:[#allocation3] sm:$0x1] %v479_v13 }
 0x20f   :  { %491 = shalt.err (!%p488_p4)
}
 0x210   :  { %369 = dma.vmem_to_hbm [thread:$0]  %s367_s30, 16, %s685_s7, [#allocation4]  }
 0x211   :  { %500 = dma.done.wait [#allocation4], 16  }
 0x212   :  { %501 = vsyncadd [#allocation4], 4294967280 }
 0x213   :  { %373 = vsyncpa [#allocation4], 1 }

</bundles_post_ra>
